<compile_context>
chip_gen: v5e
topology: v5e:2x2
jax: 0.10.0
libtpu: 0.0.40
codegen_flags: <defaults>
</compile_context>

<pallas_src>
import jax
import jax.numpy as jnp
from jax.experimental import pallas as pl
from jax.experimental.pallas import tpu as pltpu

# ---------------- model hyper-parameters (small synthetic config) -----------
BATCH = 2
NUM_SAMPLES = 1
N_JOINTS = 8                       # key pose = 8 joints * 3 coords
POSE_DIM = N_JOINTS * 3            # 24
LABEL_DIM = 8                      # object label, Identity encoder
ROT_DIM = 4                        # quaternion

ENC_H = 32                         # pose_encoder_units = [24, 32]
DEC_IN = ENC_H + LABEL_DIM         # 40  (concat of encoded pose + label)
KP_H = 64                          # pose_decoder_units = [40, 64, 24]
KP_OUT = NUM_SAMPLES * POSE_DIM    # 24
ROT_H = 32                         # object_rotation_decoder_units = [40, 32, 4]
ROT_OUT = NUM_SAMPLES * ROT_DIM    # 4

FUSED_H = KP_H + ROT_H             # 96  (fused decoder hidden, lanes 32:128)
IN_PACK = POSE_DIM + LABEL_DIM     # 32  (packed activation input width)
OUT_PAD = 128                      # lane-dense width used everywhere
SUBLANE = 8                        # f32 sublane tile

# packed-parameter slab row offsets (each block starts on an 8-row boundary)
R_W0, R_B0 = 0, 32                 # W0 rows 0:32   (32,128); b0 row 32
R_W1, R_B1 = 40, 168               # W1 rows 40:168 (128,128); b1 row 168
R_W2, R_B2 = 176, 304              # W2 rows 176:304 (128,128); b2 row 304
SLAB_ROWS = 312                    # 8-aligned total


def _round_up(x, m):
    return ((x + m - 1) // m) * m


# ---------------- Pallas kernel: fully fused encoder + both decoders --------
def ae_kernel(in_ref, p_ref, out_ref):
    xin = in_ref[...]                                # (TB, 32)  [pose | label]

    # full-lane static views into the packed parameter slab (no data movement)
    w0 = p_ref[R_W0:R_W0 + IN_PACK, :]               # (32, 128) we (+) w1l
    b0 = p_ref[R_B0:R_B0 + 1, :]                     # (1, 128)  [be | 0]
    w1 = p_ref[R_W1:R_W1 + OUT_PAD, :]               # (128,128) rows 0:32 = w1h
    b1 = p_ref[R_B1:R_B1 + 1, :]                     # (1, 128)  [0 | bd1 | br1]
    w2 = p_ref[R_W2:R_W2 + OUT_PAD, :]               # (128,128) block-diag wd2 (+) wr2
    b2 = p_ref[R_B2:R_B2 + 1, :]                     # (1, 128)  [bd2 | br2 | 0]

    # layer 0 (fused): lanes 0:32 = x@we + be, lanes 32:128 = lbl@w1l
    z0 = jnp.dot(xin, w0, preferred_element_type=jnp.float32) + b0      # (TB,128)

    # decoder layer 1 matmul: only lanes 0:32 of relu(z0) (= encoder output h)
    # contribute (W1 rows 32:128 are zero), result lands in lanes 32:128.
    z1 = jnp.dot(jnp.maximum(z0, 0.0), w1,
                 preferred_element_type=jnp.float32)                    # (TB,128)

    # add label contribution + bias, ReLU: lanes 32:128 = fused hidden h1.
    # Lanes 0:32 hold junk that is annihilated by W2's zero rows.
    s = jnp.maximum(z0 + z1 + b1, 0.0)                                  # (TB,128)

    # decoder layer 2 (block-diag): kp in lanes 0:24, rot in lanes 24:28.
    out = jnp.dot(s, w2, preferred_element_type=jnp.float32) + b2       # (TB,128)
    out_ref[...] = out.astype(out_ref.dtype)


# ---------------- wrapper: pack inputs, call kernel, post-process -----------
@jax.jit
def ae_forward(data, packed_params):
    """Mirrors model.forward(data, mode)."""
    inp_pose = data['inp_pose'].reshape(BATCH, -1).astype(jnp.float32)
    object_label = data['object_label'].reshape(BATCH, -1).astype(jnp.float32)
    # (object_rotation / key_pose are flattened in the torch code but unused)
    _ = data['object_rotation'].reshape(BATCH, -1)
    _ = data['key_pose'].reshape(BATCH, -1)

    # sublane-pad batch to 8 and pack [pose | label] into one (B_pad, 32) slab
    b_pad = _round_up(BATCH, SUBLANE)
    tb = min(b_pad, 256)              # batch tile: 256 on v6e/v7x (128 also fine on v5e)
    b_pad = _round_up(b_pad, tb)
    n_tiles = b_pad // tb

    xin = jnp.zeros((b_pad, IN_PACK), jnp.float32)
    xin = xin.at[:BATCH, :POSE_DIM].set(inp_pose)
    xin = xin.at[:BATCH, POSE_DIM:IN_PACK].set(object_label)

    flops = 2 * b_pad * (IN_PACK * OUT_PAD + 2 * OUT_PAD * OUT_PAD)
    bytes_accessed = 4 * (b_pad * (IN_PACK + OUT_PAD) + SLAB_ROWS * OUT_PAD)

    out = pl.pallas_call(
        ae_kernel,
        out_shape=jax.ShapeDtypeStruct((b_pad, OUT_PAD), jnp.float32),
        grid_spec=pltpu.PrefetchScalarGridSpec(
            num_scalar_prefetch=0,
            grid=(n_tiles,),
            in_specs=[
                pl.BlockSpec((tb, IN_PACK), lambda i: (i, 0)),
                # parameter slab: constant block index -> DMA'd once, stays resident
                pl.BlockSpec((SLAB_ROWS, OUT_PAD), lambda i: (0, 0)),
            ],
            out_specs=pl.BlockSpec((tb, OUT_PAD), lambda i: (i, 0)),
        ),
        compiler_params=pltpu.CompilerParams(
            dimension_semantics=("parallel",)),
        cost_estimate=pl.CostEstimate(flops=flops, transcendentals=0,
                                      bytes_accessed=bytes_accessed),
    )(xin, packed_params)

    kp_flat = out[:BATCH, :KP_OUT]
    rot_flat = out[:BATCH, KP_OUT:KP_OUT + ROT_OUT]

    # same output post-processing as the torch module (squeeze the samples dim
    # only -- identical result for this config, robust if BATCH were ever 1).
    key_pose = kp_flat.reshape(BATCH, NUM_SAMPLES, -1, 3).squeeze(axis=1)
    object_rotation = rot_flat.reshape(BATCH, NUM_SAMPLES, -1).squeeze(axis=1)
    return {'key_pose': key_pose, 'object_rotation': object_rotation}


# ---------------- deterministic parameter init + host-side packing ----------
def init_params(key):
    def linear(key, fan_in, fan_out):
        kw, kb = jax.random.split(key)
        bound = 1.0 / jnp.sqrt(fan_in)
        w = jax.random.uniform(kw, (fan_in, fan_out), jnp.float32, -bound, bound)
        b = jax.random.uniform(kb, (1, fan_out), jnp.float32, -bound, bound)
        return w, b

    keys = jax.random.split(key, 5)
    we, be = linear(keys[0], POSE_DIM, ENC_H)
    wd1, bd1 = linear(keys[1], DEC_IN, KP_H)
    wd2, bd2 = linear(keys[2], KP_H, KP_OUT)
    wr1, br1 = linear(keys[3], DEC_IN, ROT_H)
    wr2, br2 = linear(keys[4], ROT_H, ROT_OUT)
    # split first-decoder-layer weights into the encoded-pose part and the
    # label part (equivalent to the torch.cat along the feature dim).
    return dict(
        we=we, be=be,
        wd1h=wd1[:ENC_H, :], wd1l=wd1[ENC_H:, :], bd1=bd1, wd2=wd2, bd2=bd2,
        wr1h=wr1[:ENC_H, :], wr1l=wr1[ENC_H:, :], br1=br1, wr2=wr2, br2=br2,
    )


def pack_params(p):
    """Pack every weight/bias into one (312, 128) f32 slab, pre-padded to full
    128-lane width so every kernel view is dense/unmasked.

      W0 (32,128): rows 0:24  cols  0:32  = we        (pose -> encoder)
                   rows 24:32 cols 32:128 = [wd1l|wr1l] (label -> layer-1 contrib)
      b0 ( 1,128): lanes 0:32 = be
      W1 (128,128): rows 0:32 cols 32:128 = [wd1h|wr1h] (enc h -> layer-1); rest 0
      b1 ( 1,128): lanes 32:128 = [bd1|br1]
      W2 (128,128): rows 32:96  cols 0:24  = wd2
                    rows 96:128 cols 24:28 = wr2 ; rest 0
      b2 ( 1,128): lanes 0:24 = bd2, lanes 24:28 = br2
    """
    slab = jnp.zeros((SLAB_ROWS, OUT_PAD), jnp.float32)
    # layer 0 (block-diagonal we (+) w1l)
    slab = slab.at[R_W0:R_W0 + POSE_DIM, 0:ENC_H].set(p['we'])
    w1l = jnp.concatenate([p['wd1l'], p['wr1l']], axis=1)          # (8, 96)
    slab = slab.at[R_W0 + POSE_DIM:R_W0 + IN_PACK,
                   ENC_H:ENC_H + FUSED_H].set(w1l)
    slab = slab.at[R_B0, 0:ENC_H].set(p['be'].reshape(-1))
    # fused decoder layer 1 (encoder-hidden part)
    w1h = jnp.concatenate([p['wd1h'], p['wr1h']], axis=1)          # (32, 96)
    slab = slab.at[R_W1:R_W1 + ENC_H, ENC_H:ENC_H + FUSED_H].set(w1h)
    b1 = jnp.concatenate([p['bd1'], p['br1']], axis=1).reshape(-1)  # (96,)
    slab = slab.at[R_B1, ENC_H:ENC_H + FUSED_H].set(b1)
    # fused decoder layer 2 (block-diagonal wd2 (+) wr2, shifted by 32 rows)
    slab = slab.at[R_W2 + ENC_H:R_W2 + ENC_H + KP_H, 0:KP_OUT].set(p['wd2'])
    slab = slab.at[R_W2 + ENC_H + KP_H:R_W2 + ENC_H + FUSED_H,
                   KP_OUT:KP_OUT + ROT_OUT].set(p['wr2'])
    slab = slab.at[R_B2, 0:KP_OUT].set(p['bd2'].reshape(-1))
    slab = slab.at[R_B2, KP_OUT:KP_OUT + ROT_OUT].set(p['br2'].reshape(-1))
    return slab


if __name__ == "__main__":
    root = jax.random.PRNGKey(0)
    kp_, kd1, kd2, kd3, kd4 = jax.random.split(root, 5)

    params = init_params(kp_)
    packed = pack_params(params)
    data = {
        'inp_pose': jax.random.normal(kd1, (BATCH, N_JOINTS, 3), jnp.float32),
        'key_pose': jax.random.normal(kd2, (BATCH, N_JOINTS, 3), jnp.float32),
        'object_label': jax.random.normal(kd3, (BATCH, LABEL_DIM), jnp.float32),
        'object_rotation': jax.random.normal(kd4, (BATCH, ROT_DIM), jnp.float32),
    }

    out = ae_forward(data, packed)
    jax.block_until_ready(out)

    assert out['key_pose'].shape == (BATCH, N_JOINTS, 3), out['key_pose'].shape
    assert out['object_rotation'].shape == (BATCH, ROT_DIM), out['object_rotation'].shape

    # pure-JAX reference check against the ORIGINAL (unfused) parameters
    def ref(data, p):
        x = data['inp_pose'].reshape(BATCH, -1)
        lbl = data['object_label'].reshape(BATCH, -1)
        h = jnp.maximum(x @ p['we'] + p['be'], 0.0)
        hk = jnp.maximum(h @ p['wd1h'] + lbl @ p['wd1l'] + p['bd1'], 0.0)
        kp = hk @ p['wd2'] + p['bd2']
        hr = jnp.maximum(h @ p['wr1h'] + lbl @ p['wr1l'] + p['br1'], 0.0)
        rot = hr @ p['wr2'] + p['br2']
        return (kp.reshape(BATCH, NUM_SAMPLES, -1, 3).squeeze(axis=1),
                rot.reshape(BATCH, NUM_SAMPLES, -1).squeeze(axis=1))

    kp_ref, rot_ref = ref(data, params)
    assert jnp.allclose(out['key_pose'], kp_ref, atol=1e-5)
    assert jnp.allclose(out['object_rotation'], rot_ref, atol=1e-5)

    print("KERNEL_OK")
</pallas_src>

<mosaic_0001>
module attributes {stable_mosaic.version = 11 : i64} {
  func.func @ae_kernel(%arg0: i32, %arg1: memref<8x32xf32, #tpu.memory_space<vmem>>, %arg2: memref<312x128xf32, #tpu.memory_space<vmem>>, %arg3: memref<8x128xf32, #tpu.memory_space<vmem>>) attributes {dimension_semantics = [#tpu.dimension_semantics<parallel>], iteration_bounds = array<i64: 1>, scalar_prefetch = 0 : i64, scratch_operands = 0 : i64, tpu.core_type = #tpu.core_type<tc>, window_params = [{transform_indices = @transform_0, window_bounds = array<i64: 8, 32>}, {pipeline_mode = #tpu.pipeline_mode<synchronous>, transform_indices = @transform_1, window_bounds = array<i64: 312, 128>}, {transform_indices = @transform_2, window_bounds = array<i64: 8, 128>}]} {
    %c0 = arith.constant 0 : index
    %c0_0 = arith.constant 0 : index
    %0 = vector.load %arg1[%c0, %c0_0] : memref<8x32xf32, #tpu.memory_space<vmem>>, vector<8x32xf32>
    %c0_1 = arith.constant 0 : index
    %c0_2 = arith.constant 0 : index
    %1 = vector.load %arg2[%c0_1, %c0_2] : memref<312x128xf32, #tpu.memory_space<vmem>>, vector<32x128xf32>
    %c32 = arith.constant 32 : index
    %c0_3 = arith.constant 0 : index
    %2 = vector.load %arg2[%c32, %c0_3] : memref<312x128xf32, #tpu.memory_space<vmem>>, vector<1x128xf32>
    %c40 = arith.constant 40 : index
    %c0_4 = arith.constant 0 : index
    %3 = vector.load %arg2[%c40, %c0_4] : memref<312x128xf32, #tpu.memory_space<vmem>>, vector<128x128xf32>
    %c168 = arith.constant 168 : index
    %c0_5 = arith.constant 0 : index
    %4 = vector.load %arg2[%c168, %c0_5] : memref<312x128xf32, #tpu.memory_space<vmem>>, vector<1x128xf32>
    %c176 = arith.constant 176 : index
    %c0_6 = arith.constant 0 : index
    %5 = vector.load %arg2[%c176, %c0_6] : memref<312x128xf32, #tpu.memory_space<vmem>>, vector<128x128xf32>
    %c304 = arith.constant 304 : index
    %c0_7 = arith.constant 0 : index
    %6 = vector.load %arg2[%c304, %c0_7] : memref<312x128xf32, #tpu.memory_space<vmem>>, vector<1x128xf32>
    %cst = arith.constant dense<0.000000e+00> : vector<8x128xf32>
    %7 = tpu.matmul %0, %1, %cst {dimension_numbers = #tpu.dot_dimension_numbers<[1], [0], [0], [1], [0, 0, 1, 1], [], []>} : vector<8x32xf32>, vector<32x128xf32>, vector<8x128xf32> -> vector<8x128xf32>
    %8 = vector.broadcast %2 : vector<1x128xf32> to vector<8x128xf32>
    %9 = arith.addf %7, %8 : vector<8x128xf32>
    %cst_8 = arith.constant 0.000000e+00 : f32
    %10 = vector.broadcast %cst_8 : f32 to vector<8x128xf32>
    %11 = arith.maximumf %9, %10 : vector<8x128xf32>
    %cst_9 = arith.constant dense<0.000000e+00> : vector<8x128xf32>
    %12 = tpu.matmul %11, %3, %cst_9 {dimension_numbers = #tpu.dot_dimension_numbers<[1], [0], [0], [1], [0, 0, 1, 1], [], []>} : vector<8x128xf32>, vector<128x128xf32>, vector<8x128xf32> -> vector<8x128xf32>
    %13 = arith.addf %9, %12 : vector<8x128xf32>
    %14 = vector.broadcast %4 : vector<1x128xf32> to vector<8x128xf32>
    %15 = arith.addf %13, %14 : vector<8x128xf32>
    %cst_10 = arith.constant 0.000000e+00 : f32
    %16 = vector.broadcast %cst_10 : f32 to vector<8x128xf32>
    %17 = arith.maximumf %15, %16 : vector<8x128xf32>
    %cst_11 = arith.constant dense<0.000000e+00> : vector<8x128xf32>
    %18 = tpu.matmul %17, %5, %cst_11 {dimension_numbers = #tpu.dot_dimension_numbers<[1], [0], [0], [1], [0, 0, 1, 1], [], []>} : vector<8x128xf32>, vector<128x128xf32>, vector<8x128xf32> -> vector<8x128xf32>
    %19 = vector.broadcast %6 : vector<1x128xf32> to vector<8x128xf32>
    %20 = arith.addf %18, %19 : vector<8x128xf32>
    %c0_12 = arith.constant 0 : index
    %c0_13 = arith.constant 0 : index
    %21 = vector.load %arg3[%c0_12, %c0_13] : memref<8x128xf32, #tpu.memory_space<vmem>>, vector<8x128xf32>
    tpu.vector_store %arg3[%c0_12, %c0_13], %20 {strides = array<i32>} : memref<8x128xf32, #tpu.memory_space<vmem>>, vector<8x128xf32>,
    return
  }
  func.func @transform_0(%arg0: i32) -> (i32, i32) {
    %c0_i32 = arith.constant 0 : i32
    %c0_i32_0 = arith.constant 0 : i32
    return %arg0, %c0_i32 : i32, i32
  }
  func.func @transform_1(%arg0: i32) -> (i32, i32) {
    %c0_i32 = arith.constant 0 : i32
    %c0_i32_0 = arith.constant 0 : i32
    %c0_i32_1 = arith.constant 0 : i32
    return %c0_i32, %c0_i32_0 : i32, i32
  }
  func.func @transform_2(%arg0: i32) -> (i32, i32) {
    %c0_i32 = arith.constant 0 : i32
    %c0_i32_0 = arith.constant 0 : i32
    return %arg0, %c0_i32 : i32, i32
  }
}

</mosaic_0001>

<bundles_post_ra>
// kernel: ae_forward.1
= control target key start
LH: loop header
LB: loop body
LE: loop exit
PB: predicated region body
PF: predicated region fallthrough
CT: control target
= control target key end

     0   :  { %7 = vsyncpa [#allocation3], 0  ;;  %s177_s12 = smov [#allocation2]   ;;  %s178_s14 = smov 128   ;;  %s204_s0 = inlined_call_operand.vmem [shape: f32[8,32], index: 0, kind: input, shape index: {}]   ;;  %s205_s1 = inlined_call_operand.hbm [shape: f32[312,128], index: 1, kind: input, shape index: {}]   ;;  %s206_s2 = inlined_call_operand.vmem [shape: f32[8,128], index: 2, kind: output, shape index: {}]  }
   0x1   :  { %s14_s11 = sshll.u32 %s205_s1, 4  ;;  %s16_s13 = sshll.u32 %s177_s12, 4  ;;  %s15_s11 = int_to_ptr.hbm [resolvable:$true] %s14_s11  ;;  %s17_s13 = int_to_ptr.vmem [resolvable:$true] %s16_s13 }
   0x2   :  { %s179_s15 = smov 8  }
   0x3   :  { %22 = dma.hbm_to_vmem [thread:$0]  %s15_s11, 4992, %s17_s13, [#allocation3], %s178_s14, %s178_s14, %s179_s15  }
   0x4   :  { %175 = dma.done.wait [#allocation3], 4992  }
   0x5   :  { %176 = vsyncadd [#allocation3], 4294962304  ;;  %v31_v0 = vld [vmem:[#allocation2 + $0x18] sm:$0xff]  ;;  %v30_v1 = vld [vmem:[#allocation2 + $0x10] sm:$0xff]  ;;  %vm68_vm0 = vcmask 261120  }
   0x6   :  { %84 = vmatpush.msra.mxu0 %v31_v0  ;;  %v48_v2 = vld [vmem:[#allocation2 + $0xa0] sm:$0xff]  ;;  %v29_v3 = vld [vmem:[#allocation2 + $0x8] sm:$0xff]  ;;  %v47_v4 = vld [vmem:[#allocation2 + $0x98] sm:$0xff] }
   0x7   :  { %93 = vmatpush.msra.mxu1 %v48_v2  ;;  %v46_v5 = vld [vmem:[#allocation2 + $0x90] sm:$0xff]  ;;  %v28_v6 = vld [vmem:[#allocation2] sm:$0xff]  ;;  %v45_v8 = vld [vmem:[#allocation2 + $0x88] sm:$0xff] }
   0x8   :  { %85 = vmatpush.msra.mxu0 %v30_v1  ;;  %v27_v7 = vld [vmem:[%s204_s0] sm:$0xff]  ;;  %v43_v10 = vld [vmem:[#allocation2 + $0x78] sm:$0xff]  ;;  %v42_v11 = vld [vmem:[#allocation2 + $0x70] sm:$0xff] }
   0x9   :  { %94 = vmatpush.msra.mxu1 %v47_v4  ;;  %v44_v9 = vld [vmem:[#allocation2 + $0x80] sm:$0xff]  ;;  %v41_v12 = vld [vmem:[#allocation2 + $0x68] sm:$0xff]  ;;  %v39_v14 = vld [vmem:[#allocation2 + $0x58] sm:$0xff] }
   0xa   :  { %86 = vmatpush.msra.mxu0 %v29_v3  ;;  %v40_v13 = vld [vmem:[#allocation2 + $0x60] sm:$0xff]  ;;  %v38_v15 = vld [vmem:[#allocation2 + $0x50] sm:$0xff]  ;;  %v37_v16 = vld [vmem:[#allocation2 + $0x48] sm:$0xff] }
   0xb   :  { %95 = vmatpush.msra.mxu1 %v46_v5  ;;  %v36_v17 = vld [vmem:[#allocation2 + $0x40] sm:$0xff]  ;;  %v35_v18 = vld [vmem:[#allocation2 + $0x38] sm:$0xff]  ;;  %v34_v19 = vld [vmem:[#allocation2 + $0x30] sm:$0xff] }
   0xc   :  { %87 = vmatpush.msra.mxu0 %v28_v6  ;;  %v33_v20 = vld [vmem:[#allocation2 + $0x28] sm:$0xff]  ;;  %v64_v22 = vld [vmem:[#allocation2 + $0x120] sm:$0xff]  ;;  %v63_v23 = vld [vmem:[#allocation2 + $0x118] sm:$0xff] }
   0xd   :  { %144 = vmatmul.msk.f32.vlgmr.msra.gmra.mxu0 %vm68_vm0, %v27_v7  ;;  %96 = vmatpush.msra.mxu1 %v45_v8  ;;  %v65_v21 = vld [vmem:[#allocation2 + $0x128] sm:$0xff]  ;;  %v62_v24 = vld [vmem:[#allocation2 + $0x110] sm:$0xff]  ;;  %v60_v26 = vld [vmem:[#allocation2 + $0x100] sm:$0xff] }
   0xe   :  { %118 = vmatpush.msra.mxu2 %v65_v21  ;;  %v61_v25 = vld [vmem:[#allocation2 + $0x108] sm:$0xff]  ;;  %v59_v27 = vld [vmem:[#allocation2 + $0xf8] sm:$0xff]  ;;  %v58_v28 = vld [vmem:[#allocation2 + $0xf0] sm:$0xff] }
   0xf   :  { %97 = vmatpush.msra.mxu1 %v44_v9  ;;  %v57_v29 = vld [vmem:[#allocation2 + $0xe8] sm:$0xff]  ;;  %v56_v30 = vld [vmem:[#allocation2 + $0xe0] sm:$0xff]  ;;  %v55_v31 = vld [vmem:[#allocation2 + $0xd8] sm:$0xff] }
  0x10   :  { %119 = vmatpush.msra.mxu2 %v64_v22  ;;  %v54_v32 = vld [vmem:[#allocation2 + $0xd0] sm:$0xff]  ;;  %v148_v33 = vld [vmem:[#allocation2 + $0x20] ss:$0 sm:$0xff]  ;;  %v53_v37 = vld [vmem:[#allocation2 + $0xc8] sm:$0xff] }
  0x11   :  { %98 = vmatpush.msra.mxu1 %v43_v10  ;;  %v52_v38 = vld [vmem:[#allocation2 + $0xc0] sm:$0xff]  ;;  %v51_v39 = vld [vmem:[#allocation2 + $0xb8] sm:$0xff]  ;;  %v50_v40 = vld [vmem:[#allocation2 + $0xb0] sm:$0xff] }
  0x12   :  { %120 = vmatpush.msra.mxu2 %v63_v23  ;;  %v149_v41 = vld [vmem:[#allocation2 + $0xa8] ss:$0 sm:$0xff]  ;;  %v150_v46 = vld [vmem:[#allocation2 + $0x130] ss:$0 sm:$0xff] }
  0x13   :  { %99 = vmatpush.msra.mxu1 %v42_v11 }
  0x14   :  { %121 = vmatpush.msra.mxu2 %v62_v24 }
  0x15   :  { %100 = vmatpush.msra.mxu1 %v41_v12 }
  0x16   :  { %122 = vmatpush.msra.mxu2 %v61_v25 }
  0x17   :  { %101 = vmatpush.msra.mxu1 %v40_v13 }
  0x18   :  { %123 = vmatpush.msra.mxu2 %v60_v26 }
  0x19   :  { %102 = vmatpush.msra.mxu1 %v39_v14 }
  0x1a   :  { %124 = vmatpush.msra.mxu2 %v59_v27 }
  0x1b   :  { %103 = vmatpush.msra.mxu1 %v38_v15 }
  0x1c   :  { %125 = vmatpush.msra.mxu2 %v58_v28 }
  0x1d   :  { %104 = vmatpush.msra.mxu1 %v37_v16 }
  0x1e   :  { %126 = vmatpush.msra.mxu2 %v57_v29 }
  0x1f   :  { %105 = vmatpush.msra.mxu1 %v36_v17 }
  0x20   :  { %127 = vmatpush.msra.mxu2 %v56_v30 }
  0x21   :  { %106 = vmatpush.msra.mxu1 %v35_v18 }
  0x22   :  { %128 = vmatpush.msra.mxu2 %v55_v31 }
  0x23   :  { %107 = vmatpush.msra.mxu1 %v34_v19 }
  0x24   :  { %129 = vmatpush.msra.mxu2 %v54_v32 }
  0x25   :  { %108 = vmatpush.msra.mxu1 %v33_v20 }
  0x26   :  { %130 = vmatpush.msra.mxu2 %v53_v37 }
  0x28   :  { %131 = vmatpush.msra.mxu2 %v52_v38 }
  0x2a   :  { %132 = vmatpush.msra.mxu2 %v51_v39 }
  0x2c   :  { %133 = vmatpush.msra.mxu2 %v50_v40 }
  0x8a   :  { %v89_v34 = vpop.f32.mrf.mxu0 }
  0x8b   :  { %v90_v35 = vadd.f32 %v148_v33, %v89_v34 }
  0x8d   :  { %v92_v36 = vmax.f32 %v90_v35, 0.0 }
  0x8f   :  { %109 = vmatmul.f32.vlgmr.msra.gmra.mxu1 %v92_v36 }
 0x10c   :  { %v110_v42 = vpop.f32.mrf.mxu1 }
 0x10d   :  { %v113_v43 = vadd.f32 %v110_v42, %v90_v35 }
 0x10f   :  { %v115_v44 = vadd.f32 %v149_v41, %v113_v43 }
 0x111   :  { %v116_v45 = vmax.f32 %v115_v44, 0.0 }
 0x113   :  { %134 = vmatmul.f32.vlgmr.msra.gmra.mxu2 %v116_v45 }
 0x196   :  { %v135_v47 = vpop.f32.mrf.mxu2 }
 0x197   :  { %v136_v48 = vadd.f32 %v150_v46, %v135_v47 }
 0x199   :  { %138 = vst [vmem:[%s206_s2] sm:$0xff] %v136_v48 }
 0x19a   :  { %143 = vsyncpa [#allocation3], 1 }

</bundles_post_ra>
